<compile_context>
chip_gen: v7x
topology: tpu7x:2x2x1
jax: 0.10.0
libtpu: 0.0.40
codegen_flags: <defaults>
</compile_context>

<pallas_src>
import math
import numpy as np
import jax
import jax.numpy as jnp
from jax import lax
from jax.experimental import pallas as pl
from jax.experimental.pallas import tpu as pltpu

NEG_INF_FILL = -9000000000000000.0


def dynamic_gconv_kernel(x_ref, adj_ref, eye_ref, wcat_ref, b_ref, o_ref):
    bt, j, cin = x_ref.shape
    cout = b_ref.shape[-1]

    # ---- row softmax of the masked adjacency: (bt, J, J) -------------------
    a = adj_ref[...]
    a = a - jnp.max(a, axis=-1, keepdims=True)
    e = jnp.exp(a)
    p = e * pl.reciprocal(jnp.sum(e, axis=-1, keepdims=True), approx=False)

    # Diagonal of p (== diagonal of p^T) as a (bt, J, 1) column. `eye` is a
    # tiny constant input, so no iota / compare / select is needed in-kernel.
    d = jnp.sum(p * eye_ref[...], axis=-1, keepdims=True)

    # ---- fused feature projection: one MXU matmul for both W0 and W1 -------
    y = jnp.dot(x_ref[...].reshape(bt * j, cin), wcat_ref[...],
                preferred_element_type=jnp.float32)        # (bt*J, 2*Cout)
    h0 = y[:, :cout].reshape(bt, j, cout)
    h1 = y[:, cout:].reshape(bt, j, cout)

    # Diagonal correction (replaces the adj*M matmul + eye masking).
    corr = d * (h0 - h1)                                    # (bt, J, Cout)
    bias = b_ref[...]                                       # (1, Cout)

    # ---- adjacency contraction, transpose-free: p[b]^T @ h1[b] -------------
    for b in range(bt):                 # static, small, unrolled loop
        ob = lax.dot_general(
            p[b], h1[b],
            dimension_numbers=(((0,), (0,)), ((), ())),     # contract rows of p
            preferred_element_type=jnp.float32)             # (J, Cout)
        o_ref[b] = (ob + corr[b] + bias).astype(o_ref.dtype)


def dynamic_gconv(x, adj_weight, adj_mask_np, W, bias, *, bt=None):
    """x: (B, J, Cin) f32, adj_weight: (B, nnz) f32, adj_mask_np: np.bool (J, J),
    W: (2, Cin, Cout), bias: (Cout,)."""
    B, J, Cin = x.shape
    Cout = W.shape[2]

    # Glue: dense pre-softmax adjacency via boolean-mask scatter (row-major,
    # identical semantics to `adj[:, self.m] = adj_weight` in PyTorch).
    # TODO(synk): for large B this scatter could move in-kernel via scalar-
    # prefetched (mi, mj) indices to avoid the (B, J, J) HBM round trip.
    mi, mj = np.nonzero(adj_mask_np)
    adj_dense = jnp.full((B, J, J), NEG_INF_FILL, dtype=jnp.float32)
    adj_dense = adj_dense.at[:, mi, mj].set(adj_weight)

    wcat = jnp.concatenate([W[0], W[1]], axis=-1)           # (Cin, 2*Cout)
    bias2d = bias.reshape(1, Cout)
    eye = jnp.eye(J, dtype=jnp.float32)

    if bt is None:
        # Fill the MXU (aim for bt*J >= 256) while keeping >= 2 grid steps so
        # both v7x TensorCores get work; bt must divide B.
        bt = min(max(1, 256 // J), max(1, B // 2))
        while B % bt:
            bt -= 1
    assert B % bt == 0, "bt must divide the batch size"
    nb = B // bt

    grid_spec = pltpu.PrefetchScalarGridSpec(
        num_scalar_prefetch=0,
        grid=(nb,),
        in_specs=[
            pl.BlockSpec((bt, J, Cin), lambda g: (g, 0, 0)),
            pl.BlockSpec((bt, J, J), lambda g: (g, 0, 0)),
            pl.BlockSpec((J, J), lambda g: (0, 0)),
            pl.BlockSpec((Cin, 2 * Cout), lambda g: (0, 0)),
            pl.BlockSpec((1, Cout), lambda g: (0, 0)),
        ],
        out_specs=pl.BlockSpec((bt, J, Cout), lambda g: (g, 0, 0)),
    )

    return pl.pallas_call(
        dynamic_gconv_kernel,
        out_shape=jax.ShapeDtypeStruct((B, J, Cout), jnp.float32),
        grid_spec=grid_spec,
        compiler_params=pltpu.CompilerParams(
            dimension_semantics=("parallel",)),
    )(x, adj_dense, eye, wcat, bias2d)


def dynamic_gconv_reference(x, adj_weight, adj_mask_np, W, bias):
    B, J, _ = x.shape
    mi, mj = np.nonzero(adj_mask_np)
    adj = jnp.full((B, J, J), NEG_INF_FILL, dtype=jnp.float32)
    adj = adj.at[:, mi, mj].set(adj_weight)
    adj = jax.nn.softmax(adj.reshape(-1, J), axis=1).reshape(B, J, J)
    adj = jnp.transpose(adj, (0, 2, 1))
    h0 = jnp.einsum("bjc,cd->bjd", x, W[0])
    h1 = jnp.einsum("bjc,cd->bjd", x, W[1])
    M = jnp.eye(J, dtype=jnp.float32)
    out = (jnp.einsum("bij,bjd->bid", adj * M, h0)
           + jnp.einsum("bij,bjd->bid", adj * (1.0 - M), h1))
    return out + bias.reshape(1, 1, -1)


if __name__ == "__main__":
    B, J, Cin, Cout = 2, 16, 32, 32

    # Deterministic adjacency: ring graph with self loops.
    adj_np = np.zeros((J, J), dtype=np.float32)
    for i in range(J):
        adj_np[i, i] = 1.0
        adj_np[i, (i + 1) % J] = 1.0
        adj_np[i, (i - 1) % J] = 1.0
    mask_np = adj_np > 0
    nnz = int(mask_np.sum())

    key = jax.random.PRNGKey(0)
    k_w, k_b, k_x, k_aw = jax.random.split(key, 4)

    # Parameters (deterministic, matching __init__ shapes / init distributions).
    gain = 1.414
    limit = gain * math.sqrt(6.0 / (Cin + Cout))
    W = jax.random.uniform(k_w, (2, Cin, Cout), jnp.float32, -limit, limit)
    stdv = 1.0 / math.sqrt(Cout)
    bias = jax.random.uniform(k_b, (Cout,), jnp.float32, -stdv, stdv)

    # Inputs.
    x = jax.random.normal(k_x, (B, J, Cin), jnp.float32)
    adj_weight = jax.random.normal(k_aw, (B, nnz), jnp.float32)

    ref = dynamic_gconv_reference(x, adj_weight, mask_np, W, bias)

    # Default heuristic: bt=1 here -> grid=(2,), both v7x TensorCores busy.
    out = jax.block_until_ready(dynamic_gconv(x, adj_weight, mask_np, W, bias))
    np.testing.assert_allclose(np.asarray(out), np.asarray(ref),
                               rtol=1e-5, atol=1e-5)

    # Multi-batch-per-step path (bt=B, grid=(1,)), exercising the folded loop.
    out2 = jax.block_until_ready(
        dynamic_gconv(x, adj_weight, mask_np, W, bias, bt=B))
    np.testing.assert_allclose(np.asarray(out2), np.asarray(ref),
                               rtol=1e-5, atol=1e-5)

    print("KERNEL_OK")
</pallas_src>

<mosaic_0001>
module attributes {stable_mosaic.version = 11 : i64} {
  func.func @dynamic_gconv_kernel(%arg0: i32, %arg1: memref<1x16x32xf32, #tpu.memory_space<vmem>>, %arg2: memref<1x16x16xf32, #tpu.memory_space<vmem>>, %arg3: memref<16x16xf32, #tpu.memory_space<vmem>>, %arg4: memref<32x64xf32, #tpu.memory_space<vmem>>, %arg5: memref<1x32xf32, #tpu.memory_space<vmem>>, %arg6: memref<1x16x32xf32, #tpu.memory_space<vmem>>) attributes {dimension_semantics = [#tpu.dimension_semantics<parallel>], iteration_bounds = array<i64: 2>, scalar_prefetch = 0 : i64, scratch_operands = 0 : i64, tpu.core_type = #tpu.core_type<tc>, window_params = [{transform_indices = @transform_0, window_bounds = array<i64: 1, 16, 32>}, {transform_indices = @transform_1, window_bounds = array<i64: 1, 16, 16>}, {pipeline_mode = #tpu.pipeline_mode<synchronous>, transform_indices = @transform_2, window_bounds = array<i64: 16, 16>}, {pipeline_mode = #tpu.pipeline_mode<synchronous>, transform_indices = @transform_3, window_bounds = array<i64: 32, 64>}, {pipeline_mode = #tpu.pipeline_mode<synchronous>, transform_indices = @transform_4, window_bounds = array<i64: 1, 32>}, {transform_indices = @transform_5, window_bounds = array<i64: 1, 16, 32>}]} {
    %c0 = arith.constant 0 : index
    %c0_0 = arith.constant 0 : index
    %c0_1 = arith.constant 0 : index
    %0 = vector.load %arg2[%c0, %c0_0, %c0_1] : memref<1x16x16xf32, #tpu.memory_space<vmem>>, vector<1x16x16xf32>
    %cst = arith.constant dense<0xFF800000> : vector<1x16xf32>
    %1 = vector.multi_reduction <maximumf>, %0, %cst [2] : vector<1x16x16xf32> to vector<1x16xf32>
    %2 = vector.shape_cast %1 : vector<1x16xf32> to vector<1x16x1xf32>
    %3 = vector.broadcast %2 : vector<1x16x1xf32> to vector<1x16x16xf32>
    %4 = arith.subf %0, %3 : vector<1x16x16xf32>
    %5 = math.exp %4 : vector<1x16x16xf32>
    %cst_2 = arith.constant dense<0.000000e+00> : vector<1x16xf32>
    %6 = vector.multi_reduction <add>, %5, %cst_2 [2] : vector<1x16x16xf32> to vector<1x16xf32>
    %7 = vector.shape_cast %6 : vector<1x16xf32> to vector<1x16x1xf32>
    %8 = tpu.reciprocal %7 : vector<1x16x1xf32> -> vector<1x16x1xf32>
    %9 = vector.broadcast %8 : vector<1x16x1xf32> to vector<1x16x16xf32>
    %10 = arith.mulf %5, %9 : vector<1x16x16xf32>
    %c0_3 = arith.constant 0 : index
    %c0_4 = arith.constant 0 : index
    %11 = vector.load %arg3[%c0_3, %c0_4] : memref<16x16xf32, #tpu.memory_space<vmem>>, vector<16x16xf32>
    %12 = vector.shape_cast %11 : vector<16x16xf32> to vector<1x16x16xf32>
    %13 = arith.mulf %10, %12 : vector<1x16x16xf32>
    %cst_5 = arith.constant dense<0.000000e+00> : vector<1x16xf32>
    %14 = vector.multi_reduction <add>, %13, %cst_5 [2] : vector<1x16x16xf32> to vector<1x16xf32>
    %15 = vector.shape_cast %14 : vector<1x16xf32> to vector<1x16x1xf32>
    %c0_6 = arith.constant 0 : index
    %c0_7 = arith.constant 0 : index
    %c0_8 = arith.constant 0 : index
    %16 = vector.load %arg1[%c0_6, %c0_7, %c0_8] : memref<1x16x32xf32, #tpu.memory_space<vmem>>, vector<1x16x32xf32>
    %17 = vector.shape_cast %16 : vector<1x16x32xf32> to vector<16x32xf32>
    %c0_9 = arith.constant 0 : index
    %c0_10 = arith.constant 0 : index
    %18 = vector.load %arg4[%c0_9, %c0_10] : memref<32x64xf32, #tpu.memory_space<vmem>>, vector<32x64xf32>
    %cst_11 = arith.constant dense<0.000000e+00> : vector<16x64xf32>
    %19 = tpu.matmul %17, %18, %cst_11 {dimension_numbers = #tpu.dot_dimension_numbers<[1], [0], [0], [1], [0, 0, 1, 1], [], []>} : vector<16x32xf32>, vector<32x64xf32>, vector<16x64xf32> -> vector<16x64xf32>
    %20 = vector.extract_strided_slice %19 {offsets = [0, 0], sizes = [16, 32], strides = [1, 1]} : vector<16x64xf32> to vector<16x32xf32>
    %21 = vector.shape_cast %20 : vector<16x32xf32> to vector<1x16x32xf32>
    %22 = vector.extract_strided_slice %19 {offsets = [0, 32], sizes = [16, 32], strides = [1, 1]} : vector<16x64xf32> to vector<16x32xf32>
    %23 = vector.shape_cast %22 : vector<16x32xf32> to vector<1x16x32xf32>
    %24 = arith.subf %21, %23 : vector<1x16x32xf32>
    %25 = vector.broadcast %15 : vector<1x16x1xf32> to vector<1x16x32xf32>
    %26 = arith.mulf %25, %24 : vector<1x16x32xf32>
    %c0_12 = arith.constant 0 : index
    %c0_13 = arith.constant 0 : index
    %27 = vector.load %arg5[%c0_12, %c0_13] : memref<1x32xf32, #tpu.memory_space<vmem>>, vector<1x32xf32>
    %28 = vector.shape_cast %10 : vector<1x16x16xf32> to vector<16x16xf32>
    %29 = vector.shape_cast %23 : vector<1x16x32xf32> to vector<16x32xf32>
    %cst_14 = arith.constant dense<0.000000e+00> : vector<16x32xf32>
    %30 = tpu.matmul %28, %29, %cst_14 {dimension_numbers = #tpu.dot_dimension_numbers<[0], [0], [1], [1], [0, 1, 1, 1], [], []>} : vector<16x16xf32>, vector<16x32xf32>, vector<16x32xf32> -> vector<16x32xf32>
    %31 = vector.shape_cast %26 : vector<1x16x32xf32> to vector<16x32xf32>
    %32 = arith.addf %30, %31 : vector<16x32xf32>
    %33 = vector.broadcast %27 : vector<1x32xf32> to vector<16x32xf32>
    %34 = arith.addf %32, %33 : vector<16x32xf32>
    %c0_15 = arith.constant 0 : index
    %c0_16 = arith.constant 0 : index
    %c0_17 = arith.constant 0 : index
    %35 = vector.load %arg6[%c0_15, %c0_16, %c0_17] : memref<1x16x32xf32, #tpu.memory_space<vmem>>, vector<1x16x32xf32>
    %36 = vector.shape_cast %35 : vector<1x16x32xf32> to vector<16x32xf32>
    %37 = vector.shape_cast %34 : vector<16x32xf32> to vector<1x16x32xf32>
    tpu.vector_store %arg6[%c0_15, %c0_16, %c0_17], %37 {strides = array<i32>} : memref<1x16x32xf32, #tpu.memory_space<vmem>>, vector<1x16x32xf32>,
    return
  }
  func.func @transform_0(%arg0: i32) -> (i32, i32, i32) {
    %c0_i32 = arith.constant 0 : i32
    %c0_i32_0 = arith.constant 0 : i32
    %c0_i32_1 = arith.constant 0 : i32
    return %arg0, %c0_i32, %c0_i32_0 : i32, i32, i32
  }
  func.func @transform_1(%arg0: i32) -> (i32, i32, i32) {
    %c0_i32 = arith.constant 0 : i32
    %c0_i32_0 = arith.constant 0 : i32
    %c0_i32_1 = arith.constant 0 : i32
    return %arg0, %c0_i32, %c0_i32_0 : i32, i32, i32
  }
  func.func @transform_2(%arg0: i32) -> (i32, i32) {
    %c0_i32 = arith.constant 0 : i32
    %c0_i32_0 = arith.constant 0 : i32
    %c0_i32_1 = arith.constant 0 : i32
    return %c0_i32, %c0_i32_0 : i32, i32
  }
  func.func @transform_3(%arg0: i32) -> (i32, i32) {
    %c0_i32 = arith.constant 0 : i32
    %c0_i32_0 = arith.constant 0 : i32
    %c0_i32_1 = arith.constant 0 : i32
    return %c0_i32, %c0_i32_0 : i32, i32
  }
  func.func @transform_4(%arg0: i32) -> (i32, i32) {
    %c0_i32 = arith.constant 0 : i32
    %c0_i32_0 = arith.constant 0 : i32
    %c0_i32_1 = arith.constant 0 : i32
    return %c0_i32, %c0_i32_0 : i32, i32
  }
  func.func @transform_5(%arg0: i32) -> (i32, i32, i32) {
    %c0_i32 = arith.constant 0 : i32
    %c0_i32_0 = arith.constant 0 : i32
    %c0_i32_1 = arith.constant 0 : i32
    return %arg0, %c0_i32, %c0_i32_0 : i32, i32, i32
  }
}

</mosaic_0001>

<bundles_post_ra>
// kernel: tpu_custom_call.1
= control target key start
LH: loop header
LB: loop body
LE: loop exit
PB: predicated region body
PF: predicated region fallthrough
CT: control target
= control target key end

     0   :  { %s1408_s0 = inlined_call_operand.hbm [shape: f32[2,16,32], index: 0, kind: input, shape index: {}]   ;;  %s1409_s1 = inlined_call_operand.hbm [shape: f32[2,16,16], index: 1, kind: input, shape index: {}]   ;;  %s1410_s2 = inlined_call_operand.hbm [shape: f32[16,16], index: 2, kind: input, shape index: {}]   ;;  %s1411_s3 = inlined_call_operand.hbm [shape: f32[32,64], index: 3, kind: input, shape index: {}]   ;;  %s1412_s4 = inlined_call_operand.vmem [shape: f32[1,32], index: 4, kind: input, shape index: {}]   ;;  %s1413_s5 = inlined_call_operand.hbm [shape: f32[2,16,32], index: 5, kind: output, shape index: {}]  }
   0x1   :  { %1421 = sst [smem:[#allocation16_spill]] %s1408_s0 }
   0x2   :  { %1422 = sst [smem:[#allocation17_spill]] %s1410_s2 }
   0x3   :  { %10 = vsyncpa [#allocation3], 0 }
   0x4   :  { %12 = vsyncpa [#allocation3 + $0x1], 0 }
   0x5   :  { %13 = vsyncpa [#allocation6], 0 }
   0x6   :  { %15 = vsyncpa [#allocation6 + $0x1], 0 }
   0x7   :  { %16 = vsyncpa [#allocation9], 0 }
   0x8   :  { %17 = vsyncpa [#allocation4], 0 }
   0x9   :  { %19 = vsyncpa [#allocation4 + $0x1], 0  ;;  %s1092_s18 = smov 0   ;;  %s1094_s19 = smov 0  }
   0xa   :  { %s1096_s20 = smov 0   ;;  %s1098_s21 = smov 0  }
   0xb LB: > { %s1113_s22 = sadd.s32 4294967295, %s1050_s21   ;;  %s700_s23 = sadd.s32 4294967294, %s1050_s21   ;;  %s1050_s21 = sphi %s1098_s21, %s1445_s21   ;;  %s1046_s20 = sphi %s1096_s20, %s1444_s20   ;;  %s1042_s19 = sphi %s1094_s19, %s1443_s19   ;;  %s1038_s18 = sphi %s1092_s18, %s1442_s18  }
   0xc   : > { %p45_p0 = scmp.ne.s32.totalorder %s1042_s19, %s1038_s18  ;;  %p1414_p1 = scmp.eq.s32.totalorder %s1113_s22, 0 }
   0xd   : > { %p164_p3 = scmp.eq.s32.totalorder %s700_s23, 1  ;;  %p701_p5 = scmp.ge.s32.totalorder %s1050_s21, 1 }
   0xe   : > { %p1122_p4 = por %p1414_p1, %p45_p0  ;;  %p171_p7 = scmp.lt.s32.totalorder %s1050_s21, 3 }
   0xf   : > { %p1127_p6 = por %p164_p3, %p45_p0  ;;  %s1052_s27 = smov [#allocation7]  }
  0x10   : > { %s1423_s24 = scalar_select %p1122_p4, 1, 0 }
  0x11   : > { %s1424_s25 = scalar_select %p1127_p6, 1, 0 }
  0x12   : > { %p1132_p8 = pnand %p701_p5, %p171_p7  ;;  %s183_s28 = sshll.u32 %s1052_s27, 4  ;;  %s1136_s28 = int_to_ptr.vmem [resolvable:$true] %s183_s28 }
  0x13   : > { %s1053_s30 = smov [#allocation8]   ;;  %s1427_s2 = sld [smem:[#allocation17_spill]] }
  0x14   : > { %p784_p9 = pneg %p1132_p8  ;;  %s196_s6 = sshll.u32 %s1053_s30, 4  ;;  %s1147_s6 = int_to_ptr.vmem [resolvable:$true] %s196_s6 }
  0x16   : > { %p1143_p11 = pnand %p784_p9, %p1414_p1 }
  0x18   : > { %p858_p13 = pneg %p1143_p11 }
  0x19   : > { %s856_s9 = scalar_lea.hbm %s1427_s2, 256 }
  0x1a   : > { %p857_p12 = scmp.ne.s32.totalorder %s1427_s2, %s856_s9  ;;  %p863_p5 = scmp.lt.u32.totalorder %s856_s9, %s1427_s2 }
  0x1c   : > { %p859_p0 = pnand %p858_p13, %p857_p12 }
  0x1e   : > { %p860_p3 = pneg %p859_p0 }
  0x20   : > { %p865_p7 = pnand %p863_p5, %p860_p3 }
  0x22   : > { %868 = shalt.err (!%p865_p7)
}
  0x23   : > { %s869_s14 = scalar_lea.vmem %s1136_s28, 256  ;;  %p877_p2 = scmp.lt.s32.totalorder %s1136_s28, %s1136_s28 }
  0x24   : > { %p870_p9 = scmp.ne.s32.totalorder %s1136_s28, %s869_s14  ;;  %p878_p12 = scmp.lt.s32.totalorder %s869_s14, %s869_s14 }
  0x26   : > { %p872_p10 = pnand %p870_p9, %p858_p13  ;;  %p879_p0 = por %p878_p12, %p877_p2 }
  0x28   : > { %p873_p1 = pneg %p872_p10 }
  0x2a   : > { %p880_p6 = pnand %p879_p0, %p873_p1 }
  0x2c   : > { %883 = shalt.err (!%p880_p6)
}
  0x2d   : > { %s1415_s15 = smov 128   ;;  %s1417_s16 = smov 8  }
  0x2e   : > { %787 = dma.hbm_to_vmem [thread:$0]  (!%p1143_p11), %s1427_s2, 256, %s1136_s28, [#allocation6], %s1415_s15, %s1415_s15, %s1417_s16  }
  0x2f   : > { %s884_s7 = scalar_lea.hbm %s1411_s3, 512 }
  0x30   : > { %p885_p1 = scmp.ne.s32.totalorder %s1411_s3, %s884_s7  ;;  %p891_p10 = scmp.lt.u32.totalorder %s884_s7, %s1411_s3 }
  0x32   : > { %p887_p2 = pnand %p885_p1, %p858_p13 }
  0x34   : > { %p888_p6 = pneg %p887_p2 }
  0x36   : > { %p893_p3 = pnand %p891_p10, %p888_p6 }
  0x38   : > { %896 = shalt.err (!%p893_p3)
}
  0x39   : > { %s897_s28 = scalar_lea.vmem %s1147_s6, 512  ;;  %p905_p12 = scmp.lt.s32.totalorder %s1147_s6, %s1147_s6 }
  0x3a   : > { %p898_p5 = scmp.ne.s32.totalorder %s1147_s6, %s897_s28  ;;  %p906_p0 = scmp.lt.s32.totalorder %s897_s28, %s897_s28 }
  0x3c   : > { %p900_p7 = pnand %p898_p5, %p858_p13  ;;  %p907_p1 = por %p906_p0, %p905_p12 }
  0x3e   : > { %p901_p9 = pneg %p900_p7 }
  0x40   : > { %p908_p2 = pnand %p907_p1, %p901_p9 }
  0x42   : > { %911 = shalt.err (!%p908_p2)
}
  0x43   : > { %790 = dma.hbm_to_vmem [thread:$0]  (!%p1143_p11), %s1411_s3, 512, %s1147_s6, [#allocation9], %s1415_s15, %s1415_s15, %s1417_s16  }
  0x44   : > { %s1208_s29 = sadd.s32 1, %s1050_s21   ;;  %s32_s14 = sadd.s32 1, %s1046_s20 }
  0x45   : > { %s29_s17 = ssub.s32 %s1050_s21, %s1208_s29  ;;  %p39_p13 = scmp.ne.s32.totalorder %s1046_s20, %s1042_s19 }
  0x46   : > { %p30_p6 = scmp.eq.s32.totalorder %s29_s17, 0  ;;  %p40_p10 = scmp.eq.s32.totalorder %s1050_s21, 0 }
  0x47   : > { %p1428_p3 = scmp.eq.s32.totalorder %s1113_s22, 1  ;;  %p804_p7 = scmp.lt.s32.totalorder %s1050_s21, 2 }
  0x48   : > { %s1224_s27 = scalar_select %p30_p6, %s1046_s20, %s32_s14  }
  0x49   : > { %p1218_p5 = por %p1428_p3, %p39_p13  ;;  %p41_p9 = por %p40_p10, %p39_p13 }
  0x4a   : > { %s213_s30 = sand.u32 1, %s1046_s20   ;;  %s727_s6 = sshll.u32 %s1050_s21, 8 }
  0x4b   : > { %s1429_s23 = scalar_select %p1218_p5, 1, 0 }
  0x4c   : > { %s705_s7 = sshll.u32 %s213_s30, 4  ;;  %s1430_s0 = sld [smem:[#allocation16_spill]] }
  0x4d   : > { %s217_s11 = scalar_lea.vmem [#allocation2], %s705_s7  ;;  %p1235_p11 = pnand %p804_p7, %p41_p9 }
  0x4e   : > { %s224_s28 = sshll.u32 %s217_s11, 4  ;;  %s1242_s17 = scalar_lea.hbm %s1409_s1, %s727_s6  ;;  %s1233_s28 = int_to_ptr.vmem [resolvable:$true] %s224_s28 }
  0x4f   : > { %s238_s8 = scalar_lea.vmem [#allocation5], %s705_s7  ;;  %s1246_s15 = scalar_lea.sflag [#allocation3], %s213_s30 }
  0x50   : > { %s1244_s9 = sshll.u32 %s238_s8, 4  ;;  %p914_p0 = pneg %p1235_p11  ;;  %s1278_s9 = int_to_ptr.vmem [resolvable:$true] %s1244_s9 }
  0x52   : > { %s1231_s10 = scalar_lea.hbm %s1430_s0, %s727_s6  ;;  %s917_s13 = scalar_lea.hbm %s1430_s0, 512 }
  0x53   : > { %s912_s11 = scalar_lea.hbm %s1231_s10, 256  ;;  %p918_p13 = scmp.lt.u32.totalorder %s1231_s10, %s1430_s0 }
  0x54   : > { %p913_p12 = scmp.ne.s32.totalorder %s1231_s10, %s912_s11  ;;  %p919_p6 = scmp.lt.u32.totalorder %s917_s13, %s912_s11 }
  0x55   : > { %p921_p3 = scmp.lt.u32.totalorder %s912_s11, %s1231_s10 }
  0x56   : > { %p915_p1 = pnand %p914_p0, %p913_p12  ;;  %p920_p10 = por %p919_p6, %p918_p13 }
  0x58   : > { %p916_p2 = pneg %p915_p1  ;;  %p922_p7 = por %p921_p3, %p920_p10 }
  0x5a   : > { %p923_p9 = pnand %p922_p7, %p916_p2 }
  0x5c   : > { %926 = shalt.err (!%p923_p9)
}
  0x5d   : > { %s927_s30 = scalar_lea.vmem %s1233_s28, 256  ;;  %s1056_s2 = smov [#allocation2]  }
  0x5e   : > { %p928_p12 = scmp.ne.s32.totalorder %s1233_s28, %s927_s30  ;;  %s932_s16 = sshll.u32 %s1056_s2, 4  ;;  %s933_s16 = int_to_ptr.vmem [resolvable:$false] %s932_s16 }
  0x5f   : > { %s934_s7 = scalar_lea.vmem %s933_s16, 512  ;;  %p935_p4 = scmp.lt.s32.totalorder %s1233_s28, %s933_s16 }
  0x60   : > { %p930_p1 = pnand %p928_p12, %p914_p0  ;;  %p936_p13 = scmp.lt.s32.totalorder %s934_s7, %s927_s30 }
  0x62   : > { %p931_p5 = pneg %p930_p1  ;;  %p937_p6 = por %p936_p13, %p935_p4 }
  0x64   : > { %p938_p10 = pnand %p937_p6, %p931_p5 }
  0x66   : > { %941 = shalt.err (!%p938_p10)
}
  0x67   : > { %s1432_s8 = smov 8   ;;  %s1433_s11 = smov 128  }
  0x68   : > { %794 = dma.hbm_to_vmem [thread:$0]  (!%p1235_p11), %s1231_s10, 256, %s1233_s28, %s1246_s15, %s1433_s11, %s1433_s11, %s1432_s8  }
  0x69   : > { %s234_s13 = sand.u32 1, %s1050_s21   ;;  %s942_s6 = scalar_lea.hbm %s1242_s17, 256 }
  0x6a   : > { %s1281_s14 = scalar_lea.sflag [#allocation6], %s234_s13  ;;  %p943_p4 = scmp.ne.s32.totalorder %s1242_s17, %s942_s6 }
  0x6b   : > { %s947_s16 = scalar_lea.hbm %s1409_s1, 512  ;;  %p948_p3 = scmp.lt.u32.totalorder %s1242_s17, %s1409_s1 }
  0x6c   : > { %p945_p5 = pnand %p943_p4, %p914_p0  ;;  %p949_p7 = scmp.lt.u32.totalorder %s947_s16, %s942_s6 }
  0x6d   : > { %p951_p12 = scmp.lt.u32.totalorder %s942_s6, %s1242_s17 }
  0x6e   : > { %p946_p2 = pneg %p945_p5  ;;  %p950_p9 = por %p949_p7, %p948_p3 }
  0x70   : > { %p952_p1 = por %p951_p12, %p950_p9 }
  0x72   : > { %p953_p13 = pnand %p952_p1, %p946_p2 }
  0x74   : > { %956 = shalt.err (!%p953_p13)
}
  0x75   : > { %s957_s15 = scalar_lea.vmem %s1278_s9, 256  ;;  %s1057_s10 = smov [#allocation5]  }
  0x76   : > { %p958_p6 = scmp.ne.s32.totalorder %s1278_s9, %s957_s15  ;;  %s962_s28 = sshll.u32 %s1057_s10, 4  ;;  %s963_s28 = int_to_ptr.vmem [resolvable:$false] %s962_s28 }
  0x77   : > { %s964_s0 = scalar_lea.vmem %s963_s28, 512  ;;  %p965_p5 = scmp.lt.s32.totalorder %s1278_s9, %s963_s28 }
  0x78   : > { %p960_p10 = pnand %p958_p6, %p914_p0  ;;  %p966_p3 = scmp.lt.s32.totalorder %s964_s0, %s957_s15 }
  0x7a   : > { %p961_p4 = pneg %p960_p10  ;;  %p967_p7 = por %p966_p3, %p965_p5 }
  0x7c   : > { %p968_p9 = pnand %p967_p7, %p961_p4 }
  0x7e   : > { %971 = shalt.err (!%p968_p9)
}
  0x7f   : > { %797 = dma.hbm_to_vmem [thread:$0]  (!%p1235_p11), %s1242_s17, 256, %s1278_s9, %s1281_s14, %s1433_s11, %s1433_s11, %s1432_s8  }
  0x80   : > { %257 = sbr.rel (%p1132_p8) target bundleno = 825 (0x339), region = 40  ;;  %s1313_s13 = sand.u32 (!%p1132_p8), 1, %s1042_s19  }
  0x81   : > { %s1316_s6 = sshll.u32 (!%p1132_p8), %s1313_s13, 4  ;;  %s260_s12 = scalar_lea.sflag (!%p1132_p8), [#allocation3], %s1313_s13 }
  0x82   : > { %s263_s30 = scalar_lea.vmem (!%p1132_p8), [#allocation2], %s1316_s6  ;;  %p1434_p0 = scmp.ne.s32.totalorder (!%p1132_p8), %s1423_s24, 0 }
  0x87   : > { %1017 = dma.done.wait (%p1434_p0), %s260_s12, 256  }
  0x88   : > { %1019 = vsyncadd (%p1434_p0), %s260_s12, 4294967040  ;;  %s268_s26 = sand.u32 1, %s1113_s22   ;;  %s272_s9 = scalar_lea.vmem [#allocation5], %s1316_s6 }
  0x89   : > { %s269_s17 = scalar_lea.sflag [#allocation6], %s268_s26 }
  0x8a   : > { %1021 = dma.done.wait (%p1434_p0), %s269_s17, 256  }
  0x8b   : > { %1023 = vsyncadd (%p1434_p0), %s269_s17, 4294967040  ;;  %p1435_p8 = scmp.eq.s32.totalorder %s1113_s22, 0 }
  0x8d   : > { %1025 = dma.done.wait (%p1435_p8), [#allocation6], 256   ;;  %p1436_p11 = pmov %p1435_p8 }
  0x8e   : > { %p1437_p2 = pmov %p1435_p8 }
  0x8f   : > { %1027 = vsyncadd (%p1436_p11), [#allocation6], 4294967040 }
  0x90   : > { %1029 = dma.done.wait (%p1437_p2), [#allocation9], 512   ;;  %p1438_p12 = pmov %p1437_p2 }
  0x91   : > { %vm314_vm0 = vcmask 130048   ;;  %v312_v0 = vld [vmem:[%s272_s9] sm:$0xff]  ;;  %v350_v2 = vld [vmem:[#allocation8 + $0x8] sm:$0xff]  ;;  %vm353_vm1 = vcmask 261120   ;;  %v352_v7 = vld [vmem:[#allocation8 + $0x18] sm:$0xff]  ;;  %s1058_s24 = smov 96  }
  0x92   : > { %1031 = vsyncadd (%p1438_p12), [#allocation9], 4294966784  ;;  %v349_v1 = vld [vmem:[#allocation8] sm:$0xff]  ;;  %v315_v3 = vsel %vm314_vm0, %v312_v0, -inf  ;;  %v313_v5 = vld [vmem:[%s272_s9 + $0x8] sm:$0xff]  ;;  %s729_s14 = sshll.u32 %s1113_s22, 8 }
  0x93   : > { %v758_v4 = vpack.c.bf16 %v350_v2, %v349_v1  ;;  %v351_v6 = vld [vmem:[#allocation8 + $0x10] sm:$0xff]  ;;  %316 = vmax.xlane.f32.xlu0 %v315_v3  ;;  %v318_v10 = vsel %vm314_vm0, %v313_v5, -inf  ;;  %v348_v11 = vld [vmem:[%s263_s30 + $0x8] sm:$0xff]  ;;  %s311_s2 = scalar_lea.vmem [#allocation10], %s1316_s6  ;;  %s1360_s10 = scalar_lea.hbm %s1413_s5, %s729_s14 }
  0x94   : > { %v762_v8 = vpack.c.bf16 %v352_v7, %v351_v6  ;;  %v347_v9 = vld [vmem:[%s263_s30] sm:$0xff]  ;;  %v338_v31 = vld [vmem:[#allocation7 + $0x8] sm:$0xff]  ;;  %s585_s16 = sshll.u32 %s311_s2, 4  ;;  %s572_s22 = scalar_lea.sflag [#allocation4], %s1313_s13  ;;  %s1362_s16 = int_to_ptr.vmem [resolvable:$true] %s585_s16 }
  0x95   : > { %759 = vmatprep.subr.bf16.mxu0 %v758_v4  ;;  %748 = vmatprep.mubr.msk.f32.mxu0 %vm353_vm1, %v347_v9  ;;  %v337_v27 = vld [vmem:[#allocation7] sm:$0xff]  ;;  %s972_s28 = scalar_lea.vmem %s1362_s16, 256  ;;  %p1439_p13 = scmp.ne.s32.totalorder %s1429_s23, 0 }
  0x96   : > { %761 = vmatpush3.bf16.msra.mxu0 %v758_v4  ;;  %v721_v47 = vld [vmem:[%s1412_s4] ss:$0 sm:$0xff]  ;;  %p973_p1 = scmp.ne.s32.totalorder %s1362_s16, %s972_s28  ;;  %s1059_s0 = smov [#allocation10]  }
  0x97   : > { %763 = vmatprep.subr.bf16.mxu0 %v762_v8  ;;  %319 = vmax.xlane.f32.xlu0 %v318_v10  ;;  %s976_s6 = sshll.u32 %s1059_s0, 4  ;;  %s977_s6 = int_to_ptr.vmem [resolvable:$false] %s976_s6 }
  0x98   : > { %p974_p6 = pnand %p973_p1, %p1439_p13  ;;  %s978_s12 = scalar_lea.vmem %s977_s6, 512 }
  0x99   : > { %p979_p4 = scmp.lt.s32.totalorder %s1362_s16, %s977_s6  ;;  %p980_p5 = scmp.lt.s32.totalorder %s978_s12, %s972_s28 }
  0x9a   : > { %765 = vmatpush3.bf16.msra.mxu0 %v762_v8  ;;  %p975_p10 = pneg %p974_p6 }
  0x9b   : > { %p981_p3 = por %p980_p5, %p979_p4 }
  0x9d   : > { %749 = vmatmul.mubr.msk.f32.vlgmr.msra.gmra.mrb[0].mxu0 %vm353_vm1, %v348_v11  ;;  %p982_p7 = pnand %p981_p3, %p975_p10 }
 0x120   : > { %v317_v12 = vpop.xlane.xlu0 %316 }
 0x121   : > { %v321_v13 = vsub.f32 %v312_v0, %v317_v12 }
 0x123   : > { %v323_v14 = vmul.f32 1.442695, %v321_v13 }
 0x124   : > { %v320_v15 = vpop.xlane.xlu0 %319 }
 0x125   : > { %848 = vpow2.f32 %v323_v14  ;;  %v322_v16 = vsub.f32 %v313_v5, %v320_v15 }
 0x127   : > { %v325_v17 = vmul.f32 1.442695, %v322_v16 }
 0x129   : > { %850 = vpow2.f32 %v325_v17 }
 0x12f   : > { %v849_v18 = vpop.eup %848 }
 0x130   : > { %v327_v19 = vsel %vm314_vm0, %v849_v18, 0.0 }
 0x131   : > { %328 = vadd.xlane.f32.xlu1 %v327_v19 }
 0x133   : > { %v851_v20 = vpop.eup %850 }
 0x134   : > { %v330_v21 = vsel %vm314_vm0, %v851_v20, 0.0 }
 0x135   : > { %331 = vadd.xlane.f32.xlu1 %v330_v21 }
 0x170   : > { %v750_v22 = vpop.f32.mrb[0].mxu0 }
 0x171   : > { %v426_v23 = vpop.f32.mrb[1].mxu0  ;;  %439 = vrot.lane.b32.xlu1 %v750_v22, %s1058_s24 }
 0x172   : > { %437 = vrot.lane.b32.xlu0 %v426_v23, %s1058_s24 }
 0x1be   : > { %v329_v24 = vpop.xlane.xlu1 %328 }
 0x1bf   : > { %852 = vrcp.f32 %v329_v24 }
 0x1c2   : > { %v332_v25 = vpop.xlane.xlu1 %331 }
 0x1c3   : > { %854 = vrcp.f32 %v332_v25 }
 0x1c9   : > { %v853_v26 = vpop.eup %852 }
 0x1ca   : > { %v335_v28 = vmul.f32 %v853_v26, %v849_v18 }
 0x1cc   : > { %448 = vxpose.xlu1.b32.start [1/2] (short) (narrow) %v335_v28, 16  ;;  %v339_v29 = vmul.f32 %v337_v27, %v335_v28 }
 0x1cd   : > { %v855_v30 = vpop.eup %854 }
 0x1ce   : > { %v341_v32 = vsel %vm314_vm0, %v339_v29, 0.0  ;;  %v336_v33 = vmul.f32 %v855_v30, %v851_v20 }
 0x1cf   : > { %342 = vadd.xlane.f32.xlu0 %v341_v32 }
 0x1d0   : > { %449 = vxpose.xlu1.b32.end [2/2] (short) (narrow) %v336_v33, 16  ;;  %v340_v34 = vmul.f32 %v338_v31, %v336_v33 }
 0x1d2   : > { %v344_v35 = vsel %vm314_vm0, %v340_v34, 0.0 }
 0x1d3   : > { %345 = vadd.xlane.f32.xlu0 %v344_v35 }
 0x1e3   : > { %v440_v36 = vpop.permute.xlu1 %439 }
 0x1e4   : > { %v438_v37 = vpop.permute.xlu0 %437  ;;  %v444_v43 = vsub.f32 %v750_v22, %v440_v36 }
 0x1e5   : > { %v766_v38 = vpack.c.bf16 %v440_v36, %v438_v37  ;;  %v443_v44 = vsub.f32 %v426_v23, %v438_v37 }
 0x1e7   : > { %767 = vmatprep.subr.bf16.mxu1 %v766_v38 }
 0x1e8   : > { %769 = vmatpush3.bf16.msra.mxu1 %v766_v38 }
 0x24c   : > { %v464_v39 = vpop.trf.xlu1 }
 0x24d   : > { %755 = vmatprep.mubr.msk.f32.mxu1 %vm314_vm0, %v464_v39 }
 0x250   : > { %v465_v40 = vpop.trf.xlu1 }
 0x251   : > { %756 = vmatmul.mubr.msk.f32.vlgmr.msra.gmra.mrb[0].mxu1 %vm314_vm0, %v465_v40 }
 0x25c   : > { %v343_v41 = vpop.xlane.xlu0 %342 }
 0x25d   : > { %v445_v46 = vmul.f32 %v443_v44, %v343_v41 }
 0x260   : > { %v346_v42 = vpop.xlane.xlu0 %345 }
 0x261   : > { %v446_v45 = vmul.f32 %v444_v43, %v346_v42 }
 0x324   : > { %v757_v48 = vpop.f32.mrb[0].mxu1 }
 0x325   : > { %v558_v49 = vadd.f32 %v757_v48, %v446_v45  ;;  %v552_v50 = vpop.f32.mrb[1].mxu1 }
 0x326   : > { %v553_v51 = vadd.f32 %v552_v50, %v445_v46 }
 0x327   : > { %v568_v52 = vadd.f32 %v721_v47, %v558_v49 }
 0x328   : > { %v567_v53 = vadd.f32 %v721_v47, %v553_v51 }
 0x329   : > { %570 = vst.msk [vmem:[%s311_s2 + $0x8] sm:$0xff] %vm353_vm1, %v568_v52 }
 0x32a   : > { %569 = vst.msk [vmem:[%s311_s2] sm:$0xff] %vm353_vm1, %v567_v53 }
 0x32b   : > { %985 = shalt.err (!%p982_p7)
}
 0x32c   : > { %s986_s30 = scalar_lea.hbm %s1360_s10, 256  ;;  %s990_s9 = scalar_lea.hbm %s1413_s5, 512 }
 0x32d   : > { %p987_p9 = scmp.ne.s32.totalorder %s1360_s10, %s986_s30  ;;  %p991_p11 = scmp.lt.u32.totalorder %s1360_s10, %s1413_s5 }
 0x32e   : > { %p992_p2 = scmp.lt.u32.totalorder %s990_s9, %s986_s30  ;;  %p994_p1 = scmp.lt.u32.totalorder %s986_s30, %s1360_s10 }
 0x32f   : > { %p988_p0 = pnand %p987_p9, %p1439_p13 }
 0x330   : > { %p993_p12 = por %p992_p2, %p991_p11 }
 0x331   : > { %p989_p8 = pneg %p988_p0 }
 0x332   : > { %p995_p6 = por %p994_p1, %p993_p12 }
 0x334   : > { %p996_p10 = pnand %p995_p6, %p989_p8 }
 0x336   : > { %999 = shalt.err (!%p996_p10)
}
 0x337   : > { %s1060_s11 = smov 128   ;;  %s1061_s14 = smov 8  }
 0x338   : > { %782 = dma.vmem_to_hbm [thread:$0]  (%p1439_p13), %s1362_s16, 256, %s1360_s10, %s572_s22, %s1060_s11, %s1060_s11, %s1061_s14  }
 0x339 PF: > { %s600_s2 = sand.u32 1, %s1038_s18   ;;  %p1440_p4 = scmp.ne.s32.totalorder %s1424_s25, 0 }
 0x33a   : > { %p1441_p5 = scmp.ge.s32.totalorder %s1050_s21, 2  ;;  %s601_s7 = scalar_lea.sflag [#allocation4], %s600_s2 }
 0x33c   : > { %p799_p3 = pnand %p1441_p5, %p1440_p4 }
 0x33e   : > { %1033 = dma.done.wait (!%p799_p3), %s601_s7, 256  }
 0x33f   : > { %1035 = vsyncadd (!%p799_p3), %s601_s7, 4294967040  ;;  %p22_p7 = scmp.ge.s32.totalorder %s1208_s29, 4   ;;  %s1442_s18 = smov %s1042_s19 }
 0x340   : > { %s1443_s19 = smov %s1046_s20  ;;  %s1444_s20 = smov %s1224_s27 }
 0x341   : > { %s1445_s21 = smov %s1208_s29  ;;  %24 = sbr.rel (!%p22_p7) target bundleno = 11 (0xb), region = 106 }
 0x348   :  { %606 = vsyncpa [#allocation3], 1 }
 0x349   :  { %608 = vsyncpa [#allocation3 + $0x1], 1 }
 0x34a   :  { %609 = vsyncpa [#allocation6], 1 }
 0x34b   :  { %611 = vsyncpa [#allocation6 + $0x1], 1 }
 0x34c   :  { %612 = vsyncpa [#allocation9], 1 }
 0x34d   :  { %613 = vsyncpa [#allocation4], 1 }
 0x34e   :  { %615 = vsyncpa [#allocation4 + $0x1], 1 }

</bundles_post_ra>
